<compile_context>
chip_gen: v6e
topology: v6e:2x2x1
jax: 0.10.0
libtpu: 0.0.40
codegen_flags: <defaults>
</compile_context>

<pallas_src>
import jax
import jax.numpy as jnp
from jax import lax
from jax.experimental import pallas as pl
from jax.experimental.pallas import tpu as pltpu

# ----------------------- small config (SiglipVisionConfig-like) --------------
BATCH = 2
NUM_CHANNELS = 3
IMAGE_SIZE = 16
PATCH_SIZE = 4
HIDDEN = 32
NPS = IMAGE_SIZE // PATCH_SIZE                # num_patches_per_side = 4
NUM_PATCHES = NPS * NPS                       # 16
NUM_POSITIONS = NUM_PATCHES
CPP = NUM_CHANNELS * PATCH_SIZE * PATCH_SIZE  # 48


def _round_up(x, m):
    return (x + m - 1) // m * m


# ----------------------------- Pallas kernel ---------------------------------
def embed_kernel(x_ref, w_ref, pos_ref, o_ref):
    # x_ref:   (TILE_BN, Kp)  bf16  patches + constant-1 bias column (zero-padded)
    # w_ref:   (Kp, Dp)       bf16  conv_w^T with bias row folded in (zero-padded)
    # pos_ref: (TILE_BN, Dp)  bf16  pre-gathered position embeddings
    # o_ref:   (TILE_BN, Dp)  bf16  lane-dense output
    emb = jnp.dot(x_ref[...], w_ref[...], preferred_element_type=jnp.float32)
    # Elementwise add kept in f32 (v5e VPU has no bf16 elementwise anyway),
    # single cast at the store.
    o_ref[...] = (emb + pos_ref[...].astype(jnp.float32)).astype(o_ref.dtype)


# --------------------------- position-id glue (JAX) ---------------------------
def compute_position_ids(patch_attention_mask):
    """Reproduces the per-batch torch loop (bucketize + masked scatter).

    Assumes (like the torch module in practice) that each mask is a rectangle
    anchored at (0, 0); masked-out patches keep position id 0 (torch fill=0).
    """
    boundaries = jnp.arange(1.0 / NPS, 1.0, 1.0 / NPS)            # (NPS-1,)
    mask = patch_attention_mask.astype(jnp.int32)                  # (B, nph, npw)

    def one_batch(m):
        nb_h = jnp.sum(m[:, 0])
        nb_w = jnp.sum(m[0, :])
        flat = m.reshape(-1)
        rank = jnp.maximum(jnp.cumsum(flat) - 1, 0)                # k-th True -> k
        i = rank // jnp.maximum(nb_w, 1)
        j = rank % jnp.maximum(nb_w, 1)
        frac_h = i.astype(jnp.float32) / jnp.maximum(nb_h, 1).astype(jnp.float32)
        frac_w = j.astype(jnp.float32) / jnp.maximum(nb_w, 1).astype(jnp.float32)
        bh = jnp.searchsorted(boundaries, frac_h, side="right")    # bucketize right=True
        bw = jnp.searchsorted(boundaries, frac_w, side="right")
        pos = bh * NPS + bw
        return jnp.where(flat > 0, pos, 0).astype(jnp.int32)

    return jax.vmap(one_batch)(mask)                               # (B, num_patches)


# ------------------------------- wrapper --------------------------------------
def siglip_vision_embeddings(pixel_values, patch_attention_mask,
                             conv_w, conv_b, pos_table):
    B, C, H, W = pixel_values.shape
    P = PATCH_SIZE
    nph, npw = H // P, W // P
    n = nph * npw
    D = conv_w.shape[0]

    # NCHW -> (B*n, C*P*P), patch order row-major over (ph_idx, pw_idx),
    # per-patch flatten order (c, ph, pw) == Conv2d weight.reshape(D, -1) order.
    x = pixel_values.reshape(B, C, nph, P, npw, P)
    x = jnp.transpose(x, (0, 2, 4, 1, 3, 5))
    patches = x.reshape(B * n, C * P * P)

    bn = B * n
    k = C * P * P + 1                  # +1 for folded bias column
    k_pad = _round_up(k, 128)          # lane-dense contraction dim
    d_pad = _round_up(D, 128)          # lane-dense output dim

    # BN tile: 512 (multiple of 256 for v6e/v7x MXU) at real sizes; 16-aligned
    # (bf16 packs 2 rows per sublane) and covering all rows at toy sizes.
    tile_bn = 512 if bn >= 512 else _round_up(bn, 16)
    bn_pad = _round_up(bn, tile_bn)
    n_tiles = bn_pad // tile_bn

    # Fold bias into the matmul: constant-1 column on patches, bias row on w^T.
    patches_aug = jnp.concatenate(
        [patches, jnp.ones((bn, 1), patches.dtype)], axis=1).astype(jnp.bfloat16)
    patches_pad = jnp.pad(patches_aug, ((0, bn_pad - bn), (0, k_pad - k)))

    wT = conv_w.reshape(D, -1).T                                   # (CPP, D)
    w_aug = jnp.concatenate([wT, conv_b.reshape(1, D)], axis=0).astype(jnp.bfloat16)
    w_pad = jnp.pad(w_aug, ((0, k_pad - k), (0, d_pad - D)))

    # Pre-gather position embeddings (real gather, not a one-hot matmul).
    position_ids = compute_position_ids(patch_attention_mask)      # (B, n) int32
    pos_emb = pos_table[position_ids.reshape(-1)].astype(jnp.bfloat16)   # (bn, D)
    pos_pad = jnp.pad(pos_emb, ((0, bn_pad - bn), (0, d_pad - D)))

    out = pl.pallas_call(
        embed_kernel,
        out_shape=jax.ShapeDtypeStruct((bn_pad, d_pad), jnp.bfloat16),
        grid_spec=pltpu.PrefetchScalarGridSpec(
            num_scalar_prefetch=0,
            grid=(n_tiles,),
            in_specs=[
                pl.BlockSpec((tile_bn, k_pad), lambda i: (i, 0)),
                # Weight block index never changes -> single buffer saves VMEM
                # headroom (matters under v7x's 64 MiB / v5e's scoped default).
                pl.BlockSpec((k_pad, d_pad), lambda i: (0, 0),
                             pipeline_mode=pl.Buffered(1)),
                pl.BlockSpec((tile_bn, d_pad), lambda i: (i, 0)),
            ],
            out_specs=pl.BlockSpec((tile_bn, d_pad), lambda i: (i, 0)),
        ),
        compiler_params=pltpu.CompilerParams(
            # Independent BN tiles: shard across the 2 TCs on v7x.
            dimension_semantics=("parallel",),
            vmem_limit_bytes=64 * 1024 * 1024,
        ),
    )(patches_pad, w_pad, pos_pad)

    out = out[:bn, :D].reshape(B, n, D)
    return out, position_ids


# ------------------------------- reference ------------------------------------
def reference(pixel_values, position_ids, conv_w, conv_b, pos_table):
    D = conv_w.shape[0]
    conv_out = lax.conv_general_dilated(
        pixel_values.astype(jnp.float32), conv_w.astype(jnp.float32),
        window_strides=(PATCH_SIZE, PATCH_SIZE), padding="VALID",
        dimension_numbers=("NCHW", "OIHW", "NCHW"))
    conv_out = conv_out + conv_b.reshape(1, D, 1, 1)
    emb = conv_out.reshape(conv_out.shape[0], D, -1).transpose(0, 2, 1)
    return emb + pos_table[position_ids]


# --------------------------------- main ---------------------------------------
if __name__ == "__main__":
    key = jax.random.PRNGKey(0)
    k_px, k_w, k_b, k_pe = jax.random.split(key, 4)

    pixel_values = jax.random.normal(
        k_px, (BATCH, NUM_CHANNELS, IMAGE_SIZE, IMAGE_SIZE), dtype=jnp.float32)
    conv_w = 0.02 * jax.random.normal(
        k_w, (HIDDEN, NUM_CHANNELS, PATCH_SIZE, PATCH_SIZE), dtype=jnp.float32)
    conv_b = 0.01 * jax.random.normal(k_b, (HIDDEN,), dtype=jnp.float32)
    pos_table = 0.02 * jax.random.normal(
        k_pe, (NUM_POSITIONS, HIDDEN), dtype=jnp.float32)

    # Pre-round operands to bf16-representable values so the bf16-fed /
    # f32-accumulated kernel can be checked against the f32 reference
    # (remaining error is only the final bf16 output cast).
    rnd = lambda a: a.astype(jnp.bfloat16).astype(jnp.float32)
    pixel_values, conv_w, conv_b, pos_table = map(
        rnd, (pixel_values, conv_w, conv_b, pos_table))

    # patch_attention_mask: batch 0 = full image; batch 1 = 3x2 valid rectangle.
    mask = jnp.zeros((BATCH, NPS, NPS), dtype=bool)
    mask = mask.at[0].set(True)
    mask = mask.at[1, :3, :2].set(True)

    out, position_ids = siglip_vision_embeddings(
        pixel_values, mask, conv_w, conv_b, pos_table)
    out = jax.block_until_ready(out)

    ref = reference(pixel_values, position_ids, conv_w, conv_b, pos_table)
    assert out.shape == (BATCH, NUM_PATCHES, HIDDEN)
    assert out.dtype == jnp.bfloat16
    assert jnp.allclose(out.astype(jnp.float32), ref, atol=5e-3, rtol=5e-2), \
        "mismatch vs reference"

    print("KERNEL_OK")
</pallas_src>

<mosaic_0001>
module attributes {stable_mosaic.version = 11 : i64} {
  func.func @embed_kernel(%arg0: i32, %arg1: memref<32x128xbf16, #tpu.memory_space<vmem>>, %arg2: memref<128x128xbf16, #tpu.memory_space<vmem>>, %arg3: memref<32x128xbf16, #tpu.memory_space<vmem>>, %arg4: memref<32x128xbf16, #tpu.memory_space<vmem>>) attributes {dimension_semantics = [#tpu.dimension_semantics<parallel>], iteration_bounds = array<i64: 1>, scalar_prefetch = 0 : i64, scratch_operands = 0 : i64, tpu.core_type = #tpu.core_type<tc>, window_params = [{transform_indices = @transform_0, window_bounds = array<i64: 32, 128>}, {pipeline_mode = #tpu.pipeline_mode<synchronous>, transform_indices = @transform_1, window_bounds = array<i64: 128, 128>}, {transform_indices = @transform_2, window_bounds = array<i64: 32, 128>}, {transform_indices = @transform_3, window_bounds = array<i64: 32, 128>}]} {
    %c0 = arith.constant 0 : index
    %c0_0 = arith.constant 0 : index
    %0 = vector.load %arg1[%c0, %c0_0] : memref<32x128xbf16, #tpu.memory_space<vmem>>, vector<32x128xbf16>
    %c0_1 = arith.constant 0 : index
    %c0_2 = arith.constant 0 : index
    %1 = vector.load %arg2[%c0_1, %c0_2] : memref<128x128xbf16, #tpu.memory_space<vmem>>, vector<128x128xbf16>
    %cst = arith.constant dense<0.000000e+00> : vector<32x128xf32>
    %2 = tpu.matmul %0, %1, %cst {dimension_numbers = #tpu.dot_dimension_numbers<[1], [0], [0], [1], [0, 0, 1, 1], [], []>} : vector<32x128xbf16>, vector<128x128xbf16>, vector<32x128xf32> -> vector<32x128xf32>
    %c0_3 = arith.constant 0 : index
    %c0_4 = arith.constant 0 : index
    %3 = vector.load %arg3[%c0_3, %c0_4] : memref<32x128xbf16, #tpu.memory_space<vmem>>, vector<32x128xbf16>
    %4 = arith.extf %3 : vector<32x128xbf16> to vector<32x128xf32>
    %5 = arith.addf %2, %4 : vector<32x128xf32>
    %6 = arith.truncf %5 : vector<32x128xf32> to vector<32x128xbf16>
    %c0_5 = arith.constant 0 : index
    %c0_6 = arith.constant 0 : index
    %7 = vector.load %arg4[%c0_5, %c0_6] : memref<32x128xbf16, #tpu.memory_space<vmem>>, vector<32x128xbf16>
    tpu.vector_store %arg4[%c0_5, %c0_6], %6 {strides = array<i32>} : memref<32x128xbf16, #tpu.memory_space<vmem>>, vector<32x128xbf16>,
    return
  }
  func.func @transform_0(%arg0: i32) -> (i32, i32) {
    %c0_i32 = arith.constant 0 : i32
    %c0_i32_0 = arith.constant 0 : i32
    return %arg0, %c0_i32 : i32, i32
  }
  func.func @transform_1(%arg0: i32) -> (i32, i32) {
    %c0_i32 = arith.constant 0 : i32
    %c0_i32_0 = arith.constant 0 : i32
    %c0_i32_1 = arith.constant 0 : i32
    return %c0_i32, %c0_i32_0 : i32, i32
  }
  func.func @transform_2(%arg0: i32) -> (i32, i32) {
    %c0_i32 = arith.constant 0 : i32
    %c0_i32_0 = arith.constant 0 : i32
    return %arg0, %c0_i32 : i32, i32
  }
  func.func @transform_3(%arg0: i32) -> (i32, i32) {
    %c0_i32 = arith.constant 0 : i32
    %c0_i32_0 = arith.constant 0 : i32
    return %arg0, %c0_i32 : i32, i32
  }
}

</mosaic_0001>

<bundles_post_ra>
// kernel: tpu_custom_call.1
= control target key start
LH: loop header
LB: loop body
LE: loop exit
PB: predicated region body
PF: predicated region fallthrough
CT: control target
= control target key end

     0   :  { %8 = vsyncpa [#allocation3], 0  ;;  %s452_s0 = inlined_call_operand.hbm [shape: bf16[32,128], index: 0, kind: input, shape index: {}]   ;;  %s453_s1 = inlined_call_operand.hbm [shape: bf16[128,128], index: 1, kind: input, shape index: {}]   ;;  %s454_s2 = inlined_call_operand.hbm [shape: bf16[32,128], index: 2, kind: input, shape index: {}]   ;;  %s455_s3 = inlined_call_operand.hbm [shape: bf16[32,128], index: 3, kind: output, shape index: {}]  }
   0x1   :  { %9 = vsyncpa [#allocation6], 0 }
   0x2   :  { %10 = vsyncpa [#allocation4], 0  ;;  %s402_s12 = smov [#allocation5]   ;;  %s403_s14 = smov [#allocation2]  }
   0x3   :  { %s28_s13 = sshll.u32 %s402_s12, 4  ;;  %s16_s15 = sshll.u32 %s403_s14, 4  ;;  %s29_s13 = int_to_ptr.vmem [resolvable:$true] %s28_s13  ;;  %s17_s15 = int_to_ptr.vmem [resolvable:$true] %s16_s15 }
   0x4   :  { %s324_s16 = scalar_lea.vmem %s29_s13, 1024  ;;  %p329_p1 = scmp.lt.s32.totalorder %s29_s13, %s29_s13 }
   0x5   :  { %p325_p0 = scmp.ne.s32.totalorder %s29_s13, %s324_s16  ;;  %p330_p2 = scmp.lt.s32.totalorder %s324_s16, %s324_s16 }
   0x7   :  { %p331_p3 = por %p330_p2, %p329_p1 }
   0x9   :  { %p332_p4 = pnand %p331_p3, %p325_p0 }
   0xb   :  { %335 = shalt.err (!%p332_p4)
}
   0xc   :  { %s404_s17 = smov 64   ;;  %s405_s18 = smov 4  }
   0xd   :  { %34 = dma.hbm_to_vmem [thread:$0]  %s453_s1, 1024, %s29_s13, [#allocation6], %s404_s17, %s404_s17, %s405_s18  }
   0xe   :  { %s344_s21 = scalar_lea.vmem %s17_s15, 256  ;;  %p349_p6 = scmp.lt.s32.totalorder %s17_s15, %s17_s15 }
   0xf   :  { %p345_p5 = scmp.ne.s32.totalorder %s17_s15, %s344_s21  ;;  %p350_p7 = scmp.lt.s32.totalorder %s344_s21, %s344_s21 }
  0x11   :  { %p351_p8 = por %p350_p7, %p349_p6 }
  0x13   :  { %p352_p9 = pnand %p351_p8, %p345_p5 }
  0x15   :  { %355 = shalt.err (!%p352_p9)
}
  0x16   :  { %22 = dma.hbm_to_vmem [thread:$0]  %s452_s0, 256, %s17_s15, [#allocation3], %s404_s17, %s404_s17, %s405_s18  }
  0x17   :  { %s406_s24 = smov [#allocation7]  }
  0x18   :  { %s40_s25 = sshll.u32 %s406_s24, 4  ;;  %s41_s25 = int_to_ptr.vmem [resolvable:$true] %s40_s25 }
  0x19   :  { %s364_s26 = scalar_lea.vmem %s41_s25, 256  ;;  %p369_p11 = scmp.lt.s32.totalorder %s41_s25, %s41_s25 }
  0x1a   :  { %p365_p10 = scmp.ne.s32.totalorder %s41_s25, %s364_s26  ;;  %p370_p12 = scmp.lt.s32.totalorder %s364_s26, %s364_s26 }
  0x1c   :  { %p371_p13 = por %p370_p12, %p369_p11 }
  0x1e   :  { %p372_p0 = pnand %p371_p13, %p365_p10 }
  0x20   :  { %375 = shalt.err (!%p372_p0)
}
  0x21   :  { %46 = dma.hbm_to_vmem [thread:$0]  %s454_s2, 256, %s41_s25, [#allocation6], %s404_s17, %s404_s17, %s405_s18  }
  0x22   :  { %396 = dma.done.wait [#allocation3], 256  }
  0x23   :  { %397 = vsyncadd [#allocation3], 4294967040 }
  0x24   :  { %398 = dma.done.wait [#allocation6], 1280  }
  0x25   :  { %399 = vsyncadd [#allocation6], 4294966016  ;;  %v306_v0 = vld [vmem:[#allocation5 + $0x38] sm:$0xff]   ;;  %v307_v1 = vld [vmem:[#allocation5 + $0x30] sm:$0xff]   ;;  %s407_s0 = smov [#allocation8]  }
  0x26   :  { %280 = vmatprep.subr.bf16.mxu0 %v306_v0  ;;  %v308_v2 = vld [vmem:[#allocation5 + $0x28] sm:$0xff]   ;;  %v309_v3 = vld [vmem:[#allocation5 + $0x20] sm:$0xff]   ;;  %v314_v4 = vld [vmem:[#allocation2] sm:$0xff]   ;;  %s219_s2 = sshll.u32 %s407_s0, 4  ;;  %s220_s2 = int_to_ptr.vmem [resolvable:$true] %s219_s2 }
  0x27   :  { %281 = vmatpush3.bf16.msra.mxu0 %v306_v0  ;;  %296 = vmatprep.mubr.bf16.mxu0 %v314_v4  ;;  %v310_v5 = vld [vmem:[#allocation5 + $0x18] sm:$0xff]   ;;  %v311_v6 = vld [vmem:[#allocation5 + $0x10] sm:$0xff]   ;;  %v312_v7 = vld [vmem:[#allocation5 + $0x8] sm:$0xff]   ;;  %s376_s28 = scalar_lea.vmem %s220_s2, 256  ;;  %p381_p2 = scmp.lt.s32.totalorder %s220_s2, %s220_s2 }
  0x28   :  { %282 = vmatprep.subr.bf16.mxu0 %v307_v1  ;;  %v313_v8 = vld [vmem:[#allocation5] sm:$0xff]   ;;  %v315_v9 = vld [vmem:[#allocation2 + $0x8] sm:$0xff]   ;;  %v268_v10 = vld [vmem:[#allocation7 + $0x8] sm:$0xff]   ;;  %p377_p1 = scmp.ne.s32.totalorder %s220_s2, %s376_s28  ;;  %p382_p3 = scmp.lt.s32.totalorder %s376_s28, %s376_s28 }
  0x29   :  { %v251_v12 = vld [vmem:[#allocation7] sm:$0xff]   ;;  %v256_v13 = vunpack.c.l.bf16 %v268_v10  ;;  %v257_v14 = vunpack.c.h.bf16 %v268_v10 }
  0x2a   :  { %v252_v16 = vunpack.c.l.bf16 %v251_v12  ;;  %v253_v17 = vunpack.c.h.bf16 %v251_v12  ;;  %p383_p4 = por %p382_p3, %p381_p2 }
  0x2b   :  { %283 = vmatpush3.bf16.msra.mxu0 %v307_v1 }
  0x2c   :  { %284 = vmatprep.subr.bf16.mxu0 %v308_v2  ;;  %p384_p5 = pnand %p383_p4, %p377_p1 }
  0x2f   :  { %285 = vmatpush3.bf16.msra.mxu0 %v308_v2 }
  0x30   :  { %286 = vmatprep.subr.bf16.mxu0 %v309_v3 }
  0x33   :  { %287 = vmatpush3.bf16.msra.mxu0 %v309_v3 }
  0x34   :  { %288 = vmatprep.subr.bf16.mxu0 %v310_v5 }
  0x37   :  { %289 = vmatpush3.bf16.msra.mxu0 %v310_v5 }
  0x38   :  { %290 = vmatprep.subr.bf16.mxu0 %v311_v6 }
  0x3b   :  { %291 = vmatpush3.bf16.msra.mxu0 %v311_v6 }
  0x3c   :  { %292 = vmatprep.subr.bf16.mxu0 %v312_v7 }
  0x3f   :  { %293 = vmatpush3.bf16.msra.mxu0 %v312_v7 }
  0x40   :  { %294 = vmatprep.subr.bf16.mxu0 %v313_v8 }
  0x43   :  { %295 = vmatpush3.bf16.msra.mxu0 %v313_v8 }
  0x46   :  { %297 = vmatmul.mubr.bf16.vlgmr.msra.gmra.mxu0 %v315_v9 }
 0x106   :  { %v298_v11 = vpop.f32.mrf.mxu0 }
 0x107   :  { %v188_v19 = vadd.f32 %v298_v11, %v256_v13 }
 0x108   :  { %v179_v15 = vpop.f32.mrf.mxu0 }
 0x109   :  { %v180_v22 = vadd.f32 %v252_v16, %v179_v15 }
 0x10a   :  { %v299_v18 = vpop.f32.mrf.mxu0 }
 0x10b   :  { %v191_v20 = vadd.f32 %v299_v18, %v257_v14 }
 0x10c   :  { %v182_v21 = vpop.f32.mrf.mxu0 }
 0x10d   :  { %v266_v23 = vpack.c.bf16 %v191_v20, %v188_v19  ;;  %v183_v24 = vadd.f32 %v253_v17, %v182_v21 }
 0x10f   :  { %269 = vst [vmem:[#allocation8 + $0x8] sm:$0xff] %v266_v23   ;;  %v261_v25 = vpack.c.bf16 %v183_v24, %v180_v22 }
 0x111   :  { %262 = vst [vmem:[#allocation8] sm:$0xff] %v261_v25  }
 0x112   :  { %387 = shalt.err (!%p384_p5)
}
 0x113   :  { %225 = dma.vmem_to_hbm [thread:$0]  %s220_s2, 256, %s455_s3, [#allocation4], %s404_s17, %s404_s17, %s405_s18  }
 0x114   :  { %400 = dma.done.wait [#allocation4], 256  }
 0x115   :  { %401 = vsyncadd [#allocation4], 4294967040 }
 0x116   :  { %229 = vsyncpa [#allocation3], 1 }
 0x117   :  { %230 = vsyncpa [#allocation6], 1 }
 0x118   :  { %231 = vsyncpa [#allocation4], 1 }

</bundles_post_ra>
